<compile_context>
chip_gen: v6e
topology: v6e:2x2x1
jax: 0.10.0
libtpu: 0.0.40
codegen_flags: <defaults>
</compile_context>

<pallas_src>
import functools
import math

import jax
import jax.numpy as jnp
from jax.experimental import pallas as pl
from jax.experimental.pallas import tpu as pltpu


def _round_up(x, m):
    return ((x + m - 1) // m) * m


# -----------------------------------------------------------------------------
# Kernel 1: key projection, computed ONCE for all entity batches and emitted
#           pre-transposed:  K_t[b] = (hidden_states[b] @ Wk + bk)^T  -> [H, S]
# -----------------------------------------------------------------------------
def _key_projection_kernel(hs_ref, wk_ref, bk_ref, kt_ref):
    h = hs_ref[0]                                                    # [S,H] bf16
    k = jnp.dot(h, wk_ref[...], preferred_element_type=jnp.float32) + bk_ref[...]
    kt_ref[0] = k.T.astype(kt_ref.dtype)                            # [H,S] bf16


def project_keys_transposed(hs_b, wk_b, bk):
    B, S, H = hs_b.shape
    return pl.pallas_call(
        _key_projection_kernel,
        out_shape=jax.ShapeDtypeStruct((B, H, S), jnp.bfloat16),
        grid=(B,),
        in_specs=[
            pl.BlockSpec((1, S, H), lambda b: (b, 0, 0)),
            pl.BlockSpec((H, H), lambda b: (0, 0)),
            pl.BlockSpec((1, H), lambda b: (0, 0)),
        ],
        out_specs=pl.BlockSpec((1, H, S), lambda b: (b, 0, 0)),
        compiler_params=pltpu.CompilerParams(dimension_semantics=("parallel",)),
    )(hs_b, wk_b, bk)


# -----------------------------------------------------------------------------
# Kernel 2: per-entity prologue, row-batched over ALL entity batches at once:
#           q_scaled = ((ec @ Wq + bq) / sqrt(H))   and
#           pcls     = F.normalize(ProjectionHead(ec))
# -----------------------------------------------------------------------------
def _entity_prologue_kernel(ec_ref, wq_ref, bq_ref, pw1_ref, pb1_ref,
                            pw2_ref, pb2_ref, q_ref, pcls_ref, *, inv_sqrt_h):
    ec = ec_ref[...]                                                 # [TM,H] bf16
    q = (jnp.dot(ec, wq_ref[...], preferred_element_type=jnp.float32)
         + bq_ref[...]) * inv_sqrt_h
    q_ref[...] = q.astype(q_ref.dtype)

    h = jnp.maximum(
        jnp.dot(ec, pw1_ref[...], preferred_element_type=jnp.float32)
        + pb1_ref[...], 0.0)
    y = jnp.dot(h.astype(jnp.bfloat16), pw2_ref[...],
                preferred_element_type=jnp.float32) + pb2_ref[...]
    inv_norm = jax.lax.rsqrt(
        jnp.maximum(jnp.sum(y * y, axis=-1, keepdims=True), 1e-24))
    pcls_ref[...] = y * inv_norm


def entity_prologue(ec_pad_b, wq_b, bq, pw1_b, pb1, pw2_b, pb2, *, inv_sqrt_h, tm):
    R_pad, H = ec_pad_b.shape
    Ph = pw1_b.shape[1]
    P = pw2_b.shape[1]
    kernel = functools.partial(_entity_prologue_kernel, inv_sqrt_h=inv_sqrt_h)
    return pl.pallas_call(
        kernel,
        out_shape=(jax.ShapeDtypeStruct((R_pad, H), jnp.bfloat16),
                   jax.ShapeDtypeStruct((R_pad, P), jnp.float32)),
        grid=(R_pad // tm,),
        in_specs=[
            pl.BlockSpec((tm, H), lambda i: (i, 0)),
            pl.BlockSpec((H, H), lambda i: (0, 0)),
            pl.BlockSpec((1, H), lambda i: (0, 0)),
            pl.BlockSpec((H, Ph), lambda i: (0, 0)),
            pl.BlockSpec((1, Ph), lambda i: (0, 0)),
            pl.BlockSpec((Ph, P), lambda i: (0, 0)),
            pl.BlockSpec((1, P), lambda i: (0, 0)),
        ],
        out_specs=(pl.BlockSpec((tm, H), lambda i: (i, 0)),
                   pl.BlockSpec((tm, P), lambda i: (i, 0))),
        compiler_params=pltpu.CompilerParams(dimension_semantics=("parallel",)),
    )(ec_pad_b, wq_b, bq, pw1_b, pb1, pw2_b, pb2)


# -----------------------------------------------------------------------------
# Kernel 3: fused attention + projection head + classifier.
#           grid = (B,) only; all G*E entity rows are processed as one slab.
#           K_t / hidden_states / mask stream once per text batch; q and the
#           weights are grid-invariant blocks (fetched once).
# -----------------------------------------------------------------------------
def _fused_attention_kernel(q_ref, kt_ref, hs_ref, mb_ref,
                            pw1_ref, pb1_ref, pw2_ref, pb2_ref,
                            cw1_ref, cb1_ref, cw2_ref, cb2_ref,
                            *out_refs, store_probs):
    rep_ref = out_refs[0]
    logits_ref = out_refs[1]

    q = q_ref[...]                                                   # [R,H] bf16 (pre-scaled by 1/sqrt(H))
    kt = kt_ref[0]                                                   # [H,S] bf16 (pre-transposed)
    hs = hs_ref[0]                                                   # [S,H] bf16

    # scores = q @ K^T : plain MXU matmul thanks to the pre-transposed K.
    scores = jnp.dot(q, kt, preferred_element_type=jnp.float32)     # [R,S]
    scores = scores + mb_ref[0]                                      # + [1,S] mask bias

    # softmax over S in f32 (exact division; see review correctness note).
    mx = jnp.max(scores, axis=-1, keepdims=True)
    p = jnp.exp(scores - mx)
    p = p / jnp.sum(p, axis=-1, keepdims=True)
    if store_probs:
        out_refs[2][0] = p

    # context = probs @ hidden_states
    ctx = jnp.dot(p.astype(jnp.bfloat16), hs,
                  preferred_element_type=jnp.float32)                # [R,H]
    ctx_b = ctx.astype(jnp.bfloat16)

    # projection head + F.normalize
    h1 = jnp.maximum(
        jnp.dot(ctx_b, pw1_ref[...], preferred_element_type=jnp.float32)
        + pb1_ref[...], 0.0)
    y = jnp.dot(h1.astype(jnp.bfloat16), pw2_ref[...],
                preferred_element_type=jnp.float32) + pb2_ref[...]
    inv_norm = jax.lax.rsqrt(
        jnp.maximum(jnp.sum(y * y, axis=-1, keepdims=True), 1e-24))
    rep_ref[0] = y * inv_norm                                        # [R,P]

    # binary classifier; second linear produced directly as a lane-dense
    # [1, R] row (no trailing size-1 dim, no masked partial store).
    hc = jnp.maximum(
        jnp.dot(ctx_b, cw1_ref[...], preferred_element_type=jnp.float32)
        + cb1_ref[...], 0.0)
    logits = jax.lax.dot_general(
        cw2_ref[...], hc.astype(jnp.bfloat16),
        (((1,), (1,)), ((), ())),
        preferred_element_type=jnp.float32) + cb2_ref[0, 0]          # [1,R]
    logits_ref[0] = logits


def fused_attention(q_pad, K_t, hs_b, mask_bias, pw1_b, pb1, pw2_b, pb2,
                    cw1_b, cb1, cw2_b, cb2, *, output_attentions):
    R_pad, H = q_pad.shape
    B, _, S = K_t.shape
    Ph = pw1_b.shape[1]
    P = pw2_b.shape[1]
    Ch = cw1_b.shape[1]

    out_shapes = [jax.ShapeDtypeStruct((B, R_pad, P), jnp.float32),
                  jax.ShapeDtypeStruct((B, 1, R_pad), jnp.float32)]
    out_specs = [pl.BlockSpec((1, R_pad, P), lambda b: (b, 0, 0)),
                 pl.BlockSpec((1, 1, R_pad), lambda b: (b, 0, 0))]
    if output_attentions:
        out_shapes.append(jax.ShapeDtypeStruct((B, R_pad, S), jnp.float32))
        out_specs.append(pl.BlockSpec((1, R_pad, S), lambda b: (b, 0, 0)))

    kernel = functools.partial(_fused_attention_kernel,
                               store_probs=output_attentions)
    # TODO(synk): for production shapes, set pipeline_mode=pl.Buffered(1) on
    # the grid-invariant weight/q blocks and add S-chunking + an explicit
    # vmem_limit_bytes for v7x's 64 MiB VMEM.
    results = pl.pallas_call(
        kernel,
        out_shape=tuple(out_shapes),
        grid=(B,),
        in_specs=[
            pl.BlockSpec((R_pad, H), lambda b: (0, 0)),     # q slab (invariant)
            pl.BlockSpec((1, H, S), lambda b: (b, 0, 0)),   # K^T (precomputed)
            pl.BlockSpec((1, S, H), lambda b: (b, 0, 0)),   # hidden_states
            pl.BlockSpec((1, 1, S), lambda b: (b, 0, 0)),   # mask bias
            pl.BlockSpec((H, Ph), lambda b: (0, 0)),        # proj W1^T
            pl.BlockSpec((1, Ph), lambda b: (0, 0)),
            pl.BlockSpec((Ph, P), lambda b: (0, 0)),        # proj W2^T
            pl.BlockSpec((1, P), lambda b: (0, 0)),
            pl.BlockSpec((H, Ch), lambda b: (0, 0)),        # clf W1^T
            pl.BlockSpec((1, Ch), lambda b: (0, 0)),
            pl.BlockSpec((1, Ch), lambda b: (0, 0)),        # clf W2 row (bf16)
            pl.BlockSpec((1, 1), lambda b: (0, 0)),         # clf b2
        ],
        out_specs=tuple(out_specs),
        compiler_params=pltpu.CompilerParams(dimension_semantics=("parallel",)),
    )(q_pad, K_t, hs_b, mask_bias, pw1_b, pb1, pw2_b, pb2, cw1_b, cb1, cw2_b, cb2)

    if output_attentions:
        rep, logits, probs = results
    else:
        rep, logits = results
        probs = None
    return rep, logits, probs


# -----------------------------------------------------------------------------
# Parameter construction (deterministic, xavier-uniform-like; biases zero for
# BinaryClassifier per its init_parameters()).
# -----------------------------------------------------------------------------
def xavier_uniform(key, shape):
    fan_out, fan_in = shape
    bound = math.sqrt(6.0 / (fan_in + fan_out))
    return jax.random.uniform(key, shape, jnp.float32, -bound, bound)


def make_params(key, H, proj_hidden, proj_out, clf_hidden):
    keys = jax.random.split(key, 8)
    p = {}
    # EntityAttention (attention_type=2): query + key Linear(H, H)
    p["wq_t"] = xavier_uniform(keys[0], (H, H)).T
    p["bq"] = jnp.zeros((1, H), jnp.float32)
    p["wk_t"] = xavier_uniform(keys[1], (H, H)).T
    p["bk"] = jnp.zeros((1, H), jnp.float32)
    # ProjectionHead: Linear(H, proj_hidden) -> ReLU -> Linear(proj_hidden, proj_out)
    p["p_w1t"] = xavier_uniform(keys[2], (proj_hidden, H)).T
    p["p_b1"] = 0.01 * jax.random.normal(keys[3], (1, proj_hidden), jnp.float32)
    p["p_w2t"] = xavier_uniform(keys[4], (proj_out, proj_hidden)).T
    p["p_b2"] = 0.01 * jax.random.normal(keys[5], (1, proj_out), jnp.float32)
    # BinaryClassifier: Linear(H, clf_hidden) -> ReLU -> Linear(clf_hidden, 1); biases = 0
    p["c_w1t"] = xavier_uniform(keys[6], (clf_hidden, H)).T
    p["c_b1"] = jnp.zeros((1, clf_hidden), jnp.float32)
    p["c_w2_row"] = xavier_uniform(keys[7], (1, clf_hidden))
    p["c_b2"] = jnp.zeros((1, 1), jnp.float32)
    return p


# -----------------------------------------------------------------------------
# Forward pass of ContrastiveEntityExtractor (post-encoder part).
# -----------------------------------------------------------------------------
def contrastive_entity_extractor_forward(params, hidden_states, attention_mask,
                                         entity_cls_list, output_attentions=True):
    f32, bf16 = jnp.float32, jnp.bfloat16
    B, S, H = hidden_states.shape
    G = len(entity_cls_list)
    E = entity_cls_list[0].shape[0]
    # TODO(synk): entity batches are stacked on one row axis, which assumes a
    # common E across entity_cls_list; ragged E would need per-batch slicing
    # offsets (still a single fused call).
    R = G * E
    # Row padding / tiling: tiny demo pads to the 8-sublane quantum; large R
    # uses 256-row tiles (128 would be the natural quantum on v5e).
    if R >= 512:
        TM = 256
    else:
        TM = _round_up(R, 8)
    R_pad = _round_up(R, TM)
    inv_sqrt_h = 1.0 / math.sqrt(H)

    # bf16 copies for MXU operands (cast once); biases stay f32.
    hs_b = hidden_states.astype(bf16)
    wq_b = params["wq_t"].astype(bf16)
    wk_b = params["wk_t"].astype(bf16)
    pw1_b = params["p_w1t"].astype(bf16)
    pw2_b = params["p_w2t"].astype(bf16)
    cw1_b = params["c_w1t"].astype(bf16)
    cw2_b = params["c_w2_row"].astype(bf16)

    # Precompute additive mask bias once in the wrapper.
    mask_bias = ((1.0 - attention_mask.astype(f32)) * -10000.0)[:, None, :]

    # Hoisted, pre-transposed key projection: computed once, reused everywhere.
    K_t = project_keys_transposed(hs_b, wk_b, params["bk"])          # [B,H,S] bf16

    # Hoisted, row-batched Q projection (+ 1/sqrt(H)) and entity-CLS projection.
    ec_all = jnp.concatenate(entity_cls_list, axis=0).astype(bf16)   # [R, H]
    if R_pad != R:
        ec_all = jnp.pad(ec_all, ((0, R_pad - R), (0, 0)))
    q_pad, pcls_pad = entity_prologue(
        ec_all, wq_b, params["bq"], pw1_b, params["p_b1"], pw2_b, params["p_b2"],
        inv_sqrt_h=inv_sqrt_h, tm=TM)

    # Fused attention + projection head + classifier: one call, grid=(B,),
    # with all G*E entity rows folded into the matmul row dimension.
    rep, logits, probs = fused_attention(
        q_pad, K_t, hs_b, mask_bias,
        pw1_b, params["p_b1"], pw2_b, params["p_b2"],
        cw1_b, params["c_b1"], cw2_b, params["c_b2"],
        output_attentions=output_attentions)

    out = {"entity_representations": [], "entity_cls": [],
           "attention": [], "logits": []}
    for g in range(G):
        lo, hi = g * E, (g + 1) * E
        r = rep[:, lo:hi, :]                                         # [B,E,P]
        out["entity_representations"].append(r[0] if B == 1 else r)  # .squeeze(0)
        if output_attentions:
            out["attention"].append(probs[:, lo:hi, :])              # [B,E,S]
        out["logits"].append(logits[:, 0, lo:hi])                    # [B,E]
        out["entity_cls"].append(pcls_pad[lo:hi])                    # [E,P]
    return out


# -----------------------------------------------------------------------------
# Pure-JAX reference mirroring the same mixed-precision policy (bf16 at the
# MXU boundary, f32 everywhere else) for a tight correctness check.
# -----------------------------------------------------------------------------
def reference_forward(params, hidden_states, attention_mask, entity_cls_list):
    f32, bf16 = jnp.float32, jnp.bfloat16
    B, S, H = hidden_states.shape
    inv_sqrt_h = 1.0 / math.sqrt(H)

    def bdot(x, w):
        return jnp.dot(x.astype(bf16), w.astype(bf16), preferred_element_type=f32)

    def proj_head(x):
        h = jnp.maximum(bdot(x, params["p_w1t"]) + params["p_b1"], 0.0)
        y = bdot(h, params["p_w2t"]) + params["p_b2"]
        return y * jax.lax.rsqrt(
            jnp.maximum(jnp.sum(y * y, -1, keepdims=True), 1e-24))

    def classifier(x):
        h = jnp.maximum(bdot(x, params["c_w1t"]) + params["c_b1"], 0.0)
        y = jnp.dot(h.astype(bf16), params["c_w2_row"].astype(bf16).T,
                    preferred_element_type=f32)[..., 0] + params["c_b2"][0, 0]
        return y

    hs_b = hidden_states.astype(bf16)
    mask_bias = ((1.0 - attention_mask.astype(f32)) * -10000.0)[:, None, :]
    k = jnp.einsum("bsh,hk->bsk", hs_b, params["wk_t"].astype(bf16),
                   preferred_element_type=f32) + params["bk"]
    k_b = k.astype(bf16)

    out = {"entity_representations": [], "entity_cls": [],
           "attention": [], "logits": []}
    for ec in entity_cls_list:
        q = (bdot(ec, params["wq_t"]) + params["bq"]) * inv_sqrt_h
        scores = jnp.einsum("eh,bsh->bes", q.astype(bf16), k_b,
                            preferred_element_type=f32) + mask_bias
        probs = jax.nn.softmax(scores, axis=-1)
        ctx = jnp.einsum("bes,bsh->beh", probs.astype(bf16), hs_b,
                         preferred_element_type=f32)
        rep = proj_head(ctx)
        out["entity_representations"].append(rep[0] if B == 1 else rep)
        out["attention"].append(probs)
        out["logits"].append(classifier(ctx))
        out["entity_cls"].append(proj_head(ec))
    return out


if __name__ == "__main__":
    B, S, H = 2, 8, 32           # batch, sequence, encoder hidden size
    E = 4                        # entities per entity batch
    PROJ_HIDDEN, PROJ_OUT = 16, 32
    CLF_HIDDEN = 16
    N_ENTITY_BATCHES = 2

    root = jax.random.PRNGKey(0)
    k_param, k_hs, *k_ents = jax.random.split(root, 2 + N_ENTITY_BATCHES)

    params = make_params(k_param, H, PROJ_HIDDEN, PROJ_OUT, CLF_HIDDEN)

    hidden_states = jax.random.normal(k_hs, (B, S, H), jnp.float32)
    lengths = jnp.array([S, S - 3])                      # first tokens valid
    attention_mask = (jnp.arange(S)[None, :] < lengths[:, None]).astype(jnp.float32)
    entity_cls_list = [jax.random.normal(k, (E, H), jnp.float32) for k in k_ents]

    out = contrastive_entity_extractor_forward(
        params, hidden_states, attention_mask, entity_cls_list,
        output_attentions=True)
    jax.block_until_ready(out["entity_representations"])
    jax.block_until_ready(out["logits"])
    jax.block_until_ready(out["attention"])
    jax.block_until_ready(out["entity_cls"])

    # Also exercise the smaller-writeback variant (no attention probs output).
    out_np = contrastive_entity_extractor_forward(
        params, hidden_states, attention_mask, entity_cls_list,
        output_attentions=False)
    jax.block_until_ready(out_np["logits"])

    ref = reference_forward(params, hidden_states, attention_mask, entity_cls_list)
    for key in ("entity_representations", "attention", "logits", "entity_cls"):
        for got, want in zip(out[key], ref[key]):
            assert got.shape == want.shape, (key, got.shape, want.shape)
            assert jnp.allclose(got.astype(jnp.float32), want.astype(jnp.float32),
                                rtol=1e-2, atol=1e-2), key
    for got, want in zip(out_np["logits"], ref["logits"]):
        assert got.shape == want.shape
        assert jnp.allclose(got.astype(jnp.float32), want.astype(jnp.float32),
                            rtol=1e-2, atol=1e-2)

    print("KERNEL_OK")
</pallas_src>

<mosaic_0001>
module attributes {stable_mosaic.version = 11 : i64} {
  func.func @_key_projection_kernel(%arg0: i32, %arg1: memref<1x8x32xbf16, #tpu.memory_space<vmem>>, %arg2: memref<32x32xbf16, #tpu.memory_space<vmem>>, %arg3: memref<1x32xf32, #tpu.memory_space<vmem>>, %arg4: memref<1x32x8xbf16, #tpu.memory_space<vmem>>) attributes {dimension_semantics = [#tpu.dimension_semantics<parallel>], iteration_bounds = array<i64: 2>, scalar_prefetch = 0 : i64, scratch_operands = 0 : i64, tpu.core_type = #tpu.core_type<tc>, window_params = [{transform_indices = @transform_0, window_bounds = array<i64: 1, 8, 32>}, {pipeline_mode = #tpu.pipeline_mode<synchronous>, transform_indices = @transform_1, window_bounds = array<i64: 32, 32>}, {pipeline_mode = #tpu.pipeline_mode<synchronous>, transform_indices = @transform_2, window_bounds = array<i64: 1, 32>}, {transform_indices = @transform_3, window_bounds = array<i64: 1, 32, 8>}]} {
    %c0 = arith.constant 0 : index
    %c0_0 = arith.constant 0 : index
    %c0_1 = arith.constant 0 : index
    %0 = vector.load %arg1[%c0, %c0_0, %c0_1] : memref<1x8x32xbf16, #tpu.memory_space<vmem>>, vector<1x8x32xbf16>
    %1 = vector.shape_cast %0 : vector<1x8x32xbf16> to vector<8x32xbf16>
    %c0_2 = arith.constant 0 : index
    %c0_3 = arith.constant 0 : index
    %2 = vector.load %arg2[%c0_2, %c0_3] : memref<32x32xbf16, #tpu.memory_space<vmem>>, vector<32x32xbf16>
    %cst = arith.constant dense<0.000000e+00> : vector<8x32xf32>
    %3 = tpu.matmul %1, %2, %cst {dimension_numbers = #tpu.dot_dimension_numbers<[1], [0], [0], [1], [0, 0, 1, 1], [], []>} : vector<8x32xbf16>, vector<32x32xbf16>, vector<8x32xf32> -> vector<8x32xf32>
    %c0_4 = arith.constant 0 : index
    %c0_5 = arith.constant 0 : index
    %4 = vector.load %arg3[%c0_4, %c0_5] : memref<1x32xf32, #tpu.memory_space<vmem>>, vector<1x32xf32>
    %5 = vector.broadcast %4 : vector<1x32xf32> to vector<8x32xf32>
    %6 = arith.addf %3, %5 : vector<8x32xf32>
    %7 = tpu.transpose %6, [1, 0] : vector<8x32xf32> -> vector<32x8xf32>
    %8 = arith.truncf %7 : vector<32x8xf32> to vector<32x8xbf16>
    %c0_6 = arith.constant 0 : index
    %c0_7 = arith.constant 0 : index
    %c0_8 = arith.constant 0 : index
    %9 = vector.load %arg4[%c0_6, %c0_7, %c0_8] : memref<1x32x8xbf16, #tpu.memory_space<vmem>>, vector<1x32x8xbf16>
    %10 = vector.shape_cast %9 : vector<1x32x8xbf16> to vector<32x8xbf16>
    %11 = vector.shape_cast %8 : vector<32x8xbf16> to vector<1x32x8xbf16>
    tpu.vector_store %arg4[%c0_6, %c0_7, %c0_8], %11 {strides = array<i32>} : memref<1x32x8xbf16, #tpu.memory_space<vmem>>, vector<1x32x8xbf16>,
    return
  }
  func.func @transform_0(%arg0: i32) -> (i32, i32, i32) {
    %c0_i32 = arith.constant 0 : i32
    %c0_i32_0 = arith.constant 0 : i32
    %c0_i32_1 = arith.constant 0 : i32
    return %arg0, %c0_i32, %c0_i32_0 : i32, i32, i32
  }
  func.func @transform_1(%arg0: i32) -> (i32, i32) {
    %c0_i32 = arith.constant 0 : i32
    %c0_i32_0 = arith.constant 0 : i32
    %c0_i32_1 = arith.constant 0 : i32
    return %c0_i32, %c0_i32_0 : i32, i32
  }
  func.func @transform_2(%arg0: i32) -> (i32, i32) {
    %c0_i32 = arith.constant 0 : i32
    %c0_i32_0 = arith.constant 0 : i32
    %c0_i32_1 = arith.constant 0 : i32
    return %c0_i32, %c0_i32_0 : i32, i32
  }
  func.func @transform_3(%arg0: i32) -> (i32, i32, i32) {
    %c0_i32 = arith.constant 0 : i32
    %c0_i32_0 = arith.constant 0 : i32
    %c0_i32_1 = arith.constant 0 : i32
    return %arg0, %c0_i32, %c0_i32_0 : i32, i32, i32
  }
}

</mosaic_0001>

<bundles_post_ra>
// kernel: tpu_custom_call.1
= control target key start
LH: loop header
LB: loop body
LE: loop exit
PB: predicated region body
PF: predicated region fallthrough
CT: control target
= control target key end

     0   :  { %8 = vsyncpa [#allocation3], 0  ;;  %s735_s0 = inlined_call_operand.hbm [shape: bf16[2,8,32], index: 0, kind: input, shape index: {}]   ;;  %s736_s1 = inlined_call_operand.hbm [shape: bf16[32,32], index: 1, kind: input, shape index: {}]   ;;  %s737_s2 = inlined_call_operand.vmem [shape: f32[1,32], index: 2, kind: input, shape index: {}]   ;;  %s738_s3 = inlined_call_operand.vmem [shape: bf16[2,32,8], index: 3, kind: output, shape index: {}]  }
   0x1   :  { %10 = vsyncpa [#allocation3 + $0x1], 0 }
   0x2   :  { %11 = vsyncpa [#allocation5], 0  ;;  %s615_s12 = smov 0   ;;  %s617_s13 = smov 0  }
   0x3   :  { %s619_s14 = smov 0   ;;  %s621_s15 = smov 0  }
   0x4 LB: > { %s634_s16 = sadd.s32 4294967295, %s587_s15   ;;  %p37_p0 = scmp.ne.s32.totalorder %s579_s13, %s575_s12  ;;  %s587_s15 = sphi %s621_s15, %s753_s15   ;;  %s583_s14 = sphi %s619_s14, %s752_s14   ;;  %s579_s13 = sphi %s617_s13, %s751_s13   ;;  %s575_s12 = sphi %s615_s12, %s750_s12  }
   0x5   : > { %p739_p1 = scmp.eq.s32.totalorder %s634_s16, 0  ;;  %p403_p2 = scmp.ge.s32.totalorder %s587_s15, 1 }
   0x6   : > { %p116_p3 = scmp.lt.s32.totalorder %s587_s15, 3  ;;  %s589_s19 = smov [#allocation4]  }
   0x7   : > { %p642_p4 = por %p739_p1, %p37_p0  ;;  %s128_s20 = sshll.u32 %s589_s19, 4  ;;  %s129_s20 = int_to_ptr.vmem [resolvable:$true] %s128_s20 }
   0x8   : > { %p646_p5 = pnand %p403_p2, %p116_p3  ;;  %s659_s22 = sadd.s32 1, %s587_s15  }
   0x9   : > { %s742_s17 = scalar_select %p642_p4, 1, 0 }
   0xa   : > { %s743_s18 = scalar_select %p646_p5, 1, 0 }
   0xb   : > { %p445_p6 = pneg %p646_p5  ;;  %s24_s23 = sadd.s32 1, %s583_s14 }
   0xc   : > { %s21_s24 = ssub.s32 %s587_s15, %s659_s22  ;;  %s506_s25 = scalar_lea.vmem %s129_s20, 256 }
   0xd   : > { %p654_p7 = pnand %p445_p6, %p739_p1  ;;  %p507_p9 = scmp.ne.s32.totalorder %s129_s20, %s506_s25 }
   0xe   : > { %p514_p12 = scmp.lt.s32.totalorder %s129_s20, %s129_s20  ;;  %p515_p13 = scmp.lt.s32.totalorder %s506_s25, %s506_s25 }
   0xf   : > { %p497_p8 = pneg %p654_p7 }
  0x10   : > { %p516_p0 = por %p515_p13, %p514_p12 }
  0x11   : > { %p509_p10 = pnand %p507_p9, %p497_p8 }
  0x13   : > { %p510_p11 = pneg %p509_p10 }
  0x15   : > { %p517_p2 = pnand %p516_p0, %p510_p11 }
  0x17   : > { %520 = shalt.err (!%p517_p2)
}
  0x18   : > { %s590_s26 = smov 64   ;;  %s591_s27 = smov 4  }
  0x19   : > { %448 = dma.hbm_to_vmem [thread:$0]  (!%p654_p7), %s736_s1, 256, %s129_s20, [#allocation5], %s590_s26, %s590_s26, %s591_s27  }
  0x1a   : > { %p22_p3 = scmp.eq.s32.totalorder %s21_s24, 0  ;;  %p31_p6 = scmp.ne.s32.totalorder %s583_s14, %s579_s13 }
  0x1b   : > { %p32_p8 = scmp.eq.s32.totalorder %s587_s15, 0  ;;  %p454_p9 = scmp.lt.s32.totalorder %s587_s15, 2 }
  0x1c   : > { %s676_s30 = scalar_select %p22_p3, %s583_s14, %s24_s23  }
  0x1d   : > { %p33_p10 = por %p32_p8, %p31_p6  ;;  %s145_s4 = sand.u32 1, %s583_s14  }
  0x1e   : > { %s406_s5 = sshll.u32 %s145_s4, 2  ;;  %s407_s6 = sshll.u32 %s587_s15, 6 }
  0x1f   : > { %s683_s9 = scalar_lea.hbm %s735_s0, %s407_s6  ;;  %s149_s10 = scalar_lea.vmem [#allocation2], %s406_s5 }
  0x20   : > { %s156_s11 = sshll.u32 %s149_s10, 4  ;;  %p685_p7 = pnand %p454_p9, %p33_p10  ;;  %s157_s11 = int_to_ptr.vmem [resolvable:$true] %s156_s11 }
  0x21   : > { %s146_s19 = scalar_lea.sflag [#allocation3], %s145_s4  ;;  %s521_s20 = scalar_lea.hbm %s683_s9, 64 }
  0x22   : > { %p522_p11 = scmp.ne.s32.totalorder %s683_s9, %s521_s20  ;;  %p523_p12 = pneg %p685_p7 }
  0x23   : > { %s526_s23 = scalar_lea.hbm %s735_s0, 128  ;;  %p527_p2 = scmp.lt.s32.totalorder %s683_s9, %s735_s0 }
  0x24   : > { %p524_p13 = pnand %p523_p12, %p522_p11  ;;  %p528_p3 = scmp.lt.s32.totalorder %s526_s23, %s521_s20 }
  0x26   : > { %p525_p0 = pneg %p524_p13  ;;  %p529_p6 = por %p528_p3, %p527_p2 }
  0x28   : > { %p530_p8 = pnand %p529_p6, %p525_p0 }
  0x2a   : > { %533 = shalt.err (!%p530_p8)
}
  0x2b   : > { %s534_s26 = scalar_lea.vmem %s157_s11, 64  ;;  %s592_s27 = smov [#allocation2]  }
  0x2c   : > { %p535_p9 = scmp.ne.s32.totalorder %s157_s11, %s534_s26  ;;  %s539_s28 = sshll.u32 %s592_s27, 4  ;;  %s540_s28 = int_to_ptr.vmem [resolvable:$false] %s539_s28 }
  0x2d   : > { %s541_s29 = scalar_lea.vmem %s540_s28, 128  ;;  %p542_p11 = scmp.lt.s32.totalorder %s157_s11, %s540_s28 }
  0x2e   : > { %p537_p10 = pnand %p535_p9, %p523_p12  ;;  %p543_p13 = scmp.lt.s32.totalorder %s541_s29, %s534_s26 }
  0x30   : > { %p538_p1 = pneg %p537_p10  ;;  %p544_p4 = por %p543_p13, %p542_p11 }
  0x32   : > { %p545_p5 = pnand %p544_p4, %p538_p1 }
  0x34   : > { %548 = shalt.err (!%p545_p5)
}
  0x35   : > { %452 = dma.hbm_to_vmem [thread:$0]  (!%p685_p7), %s683_s9, 64, %s157_s11, %s146_s19  }
  0x36   : > { %p746_p0 = scmp.ne.s32.totalorder %s743_s18, 0 }
  0x37   : > { %s167_s4 = sand.u32 (!%p746_p0), 1, %s579_s13   ;;  %p747_p12 = scmp.ne.s32.totalorder (!%p746_p0), %s742_s17, 0 }
  0x38   : > { %165 = sbr.rel (%p746_p0) target bundleno = 409 (0x199), region = 32  ;;  %s409_s5 = sshll.u32 (!%p746_p0), %s167_s4, 2 }
  0x39   : > { %s168_s6 = scalar_lea.sflag (!%p746_p0), [#allocation3], %s167_s4  ;;  %s171_s7 = scalar_lea.vmem (!%p746_p0), [#allocation2], %s409_s5 }
  0x3d   : > { %566 = dma.done.wait (%p747_p12), %s168_s6, 64  }
  0x3e   : > { %568 = vsyncadd (%p747_p12), %s168_s6, 4294967232  ;;  %p748_p1 = scmp.eq.s32.totalorder %s634_s16, 0 }
  0x40   : > { %570 = dma.done.wait (%p748_p1), [#allocation5], 256   ;;  %p749_p4 = pmov %p748_p1 }
  0x41   : > { %v593_v0 = vmov 0.0   ;;  %vm594_vm0 = vmmov 0   ;;  %v493_v1 = vld [vmem:[#allocation4 + $0x8] sm:$0xff]   ;;  %v494_v2 = vld [vmem:[#allocation4] sm:$0xff]   ;;  %v204_v3 = vld [vmem:[%s171_s7] sm:$0xf] }
  0x42   : > { %572 = vsyncadd (%p749_p4), [#allocation5], 4294967040  ;;  %431 = vmatprep.subr.bf16.mxu0 %v593_v0  ;;  %435 = vmatprep.mubr.msk.bf16.mxu0 %vm594_vm0, %v593_v0  ;;  %vm228_vm1 = vcmask 261120   ;;  %v413_v4 = vld [vmem:[%s737_s2] ss:$0 sm:$0xff]  ;;  %p198_p5 = scmp.lt.s32.totalorder %s634_s16, 1 }
  0x43   : > { %432 = vmatpush3.bf16.msra.mxu0 %v493_v1  ;;  %vm320_vm2 = vcmask 60416  }
  0x44   : > { %433 = vmatprep.subr.bf16.mxu0 %v593_v0  ;;  %s755_s16 = smov (!%p198_p5, %s634_s16), 1 }
  0x45   : > { %s423_s8 = sshll.u32 %s755_s16, 4 }
  0x46   : > { %s202_s11 = scalar_lea.vmem %s738_s3, %s423_s8 }
  0x47   : > { %434 = vmatpush3.bf16.msra.mxu0 %v494_v2 }
  0x4a   : > { %436 = vmatmul.mubr.msk.bf16.vlgmr.msra.gmra.mxu0 %vm228_vm1, %v204_v3 }
 0x10a   : > { %v266_v5 = vpop.f32.mrf.mxu0 }
 0x10b   : > { %v267_v6 = vadd.f32 %v413_v4, %v266_v5 }
 0x10c   : > { %v437_v7 = vpop.f32.mrf.mxu0 }
 0x10d   : > { %272 = vxpose.xlu0.b32.start.end [1/1] (short) (narrow) %v267_v6, 32 }
 0x10e   : > { %v269_v8 = vpop.f32.mrf.mxu0 }
 0x110   : > { %v438_v9 = vpop.f32.mrf.mxu0 }
 0x189   : > { %v288_v10 = vpop.trf.xlu0 }
 0x18a   : > { %v424_v11 = vpack.c.bf16 %v288_v10, %v288_v10 }
 0x18c   : > { %321 = vst.msk [vmem:[%s202_s11] sm:$0xf] %vm320_vm2, %v424_v11 }
 0x18d   : > { %v289_v12 = vpop.trf.xlu0 }
 0x18e   : > { %v425_v13 = vpack.c.bf16 %v289_v12, %v289_v12 }
 0x190   : > { %322 = vst.msk [vmem:[%s202_s11 + $0x4] sm:$0xf] %vm320_vm2, %v425_v13 }
 0x191   : > { %v290_v14 = vpop.trf.xlu0 }
 0x192   : > { %v426_v15 = vpack.c.bf16 %v290_v14, %v290_v14 }
 0x194   : > { %323 = vst.msk [vmem:[%s202_s11 + $0x8] sm:$0xf] %vm320_vm2, %v426_v15 }
 0x195   : > { %v291_v16 = vpop.trf.xlu0 }
 0x196   : > { %v427_v17 = vpack.c.bf16 %v291_v16, %v291_v16 }
 0x198   : > { %324 = vst.msk [vmem:[%s202_s11 + $0xc] sm:$0xf] %vm320_vm2, %v427_v17 }
 0x199 PF: > { %p14_p7 = scmp.ge.s32.totalorder %s659_s22, 4   ;;  %s750_s12 = smov %s579_s13 }
 0x19a   : > { %s751_s13 = smov %s583_s14  ;;  %s752_s14 = smov %s676_s30 }
 0x19b   : > { %s753_s15 = smov %s659_s22  ;;  %16 = sbr.rel (!%p14_p7) target bundleno = 4 (0x4), region = 76 }
 0x1a0   :  { %346 = vsyncpa [#allocation3], 1 }
 0x1a1   :  { %348 = vsyncpa [#allocation3 + $0x1], 1 }
 0x1a2   :  { %349 = vsyncpa [#allocation5], 1 }

</bundles_post_ra>
